<compile_context>
chip_gen: v6e
topology: v6e:2x2x1
jax: 0.10.0
libtpu: 0.0.40
codegen_flags: <defaults>
</compile_context>

<pallas_src>
import math
from functools import partial

import jax
import jax.numpy as jnp
from jax.experimental import pallas as pl
from jax.experimental.pallas import tpu as pltpu

_LANES = 128
_TAN_PI_8 = 0.4142135623730951                 # tan(pi/8)
_F32_TINY = float(jnp.finfo(jnp.float32).tiny) # smallest normal f32


def _round_up(n, m):
    return pl.cdiv(n, m) * m


# ----------------------------- in-kernel math ------------------------------

def _scaled_atan2(y, x, s):
    """s * torch.arctan2(y, x) semantics, built from basic elementwise ops.

    Single fused range reduction (one reciprocal instead of two exact
    divides); all angle constants and polynomial coefficients are pre-scaled
    by `s` at trace time so the caller only adds an offset afterwards.
    """
    abs_y = jnp.abs(y)
    abs_x = jnp.abs(x)
    mx = jnp.maximum(abs_x, abs_y)
    mn = jnp.minimum(abs_x, abs_y)

    # Octant test without forming t = mn/mx first.
    big = mn > _TAN_PI_8 * mx
    num = jnp.where(big, mn - mx, mn)            # fused (t-1) numerator
    den = jnp.where(big, mn + mx, mx)            # fused (t+1) denominator
    # Guard atan2(0,0) -> 0 and keep the approx reciprocal away from
    # subnormal denominators (vrcp(subnormal) -> inf). Only perturbs results
    # when both |y| and |x| are below ~1.2e-38.
    den = jnp.where(mx < _F32_TINY, 1.0, den)

    # Exact-divide replacement: approx reciprocal (EUP slot) + 1 Newton step.
    r = pl.reciprocal(den, approx=True)
    r = r * (2.0 - den * r)
    z = num * r                                  # |z| <= tan(pi/8)
    zz = z * z

    # cephes atanf minimax polynomial; coefficients pre-scaled by s so that
    # the result is s*atan(z) = z*(s + zz*s*P(zz)).
    p = s * 8.05374449538e-2
    p = p * zz + s * -1.38776856032e-1
    p = p * zz + s * 1.99777106478e-1
    p = p * zz + s * -3.33329491539e-1
    p = (p * zz + s) * z

    a = jnp.where(big, (0.25 * math.pi) * s + p, p)          # octant unfold
    a = jnp.where(abs_y > abs_x, (0.5 * math.pi) * s - a, a)
    a = jnp.where(x < 0.0, math.pi * s - a, a)                # quadrant unfold
    # NOTE: keep strict `< 0.0` tests (no copysign): the -0.0 produced by
    # tanh(-0.0) must behave like +0.0 here to match torch.
    a = jnp.where(y < 0.0, -a, a)
    return a


# -------------------------------- kernels ----------------------------------

def _angle1_kernel(x_ref, out_ref, *, scale, offset):
    # angle_range*(0.5 - sigmoid(x)) + angle_min
    #   == (-0.5*angle_range) * tanh(x/2) + angle_min
    x = x_ref[0].astype(jnp.float32)
    out_ref[...] = scale * jnp.tanh(0.5 * x) + offset


def _angle2_kernel(x_ref, out_ref, *, scale, offset):
    # 1 - 2*sigmoid(v) == tanh(-v/2): one EUP push per channel, no extra negate.
    # TODO(synk): verify in the Mosaic bundle dump that jnp.tanh stays a single
    # EUP push and is not decomposed into exp + divide.
    px = jnp.tanh(-0.5 * x_ref[0].astype(jnp.float32))
    py = jnp.tanh(-0.5 * x_ref[1].astype(jnp.float32))
    # (angle_range/360)*rad2deg(atan2(px,py)) == atan2(px,py)*angle_range/(2*pi);
    # the scale is folded into _scaled_atan2's constants.
    out_ref[...] = _scaled_atan2(px, py, scale) + offset


# -------------------------------- wrapper -----------------------------------

def angle_parser_legacy(batch, *, ndim, angle_range=180.0, angle_min=0.0,
                        block_rows=2048):
    """batch: (B, C, H, W) with C == ndim; returns (B, H, W) float32 angles (deg)."""
    assert ndim in (1, 2)
    B, C, H, W = batch.shape
    assert C == ndim

    n = B * H * W
    rows = pl.cdiv(n, _LANES)
    # Bounded padding: pick the number of grid steps first, then the smallest
    # sublane-aligned row tile that covers `rows` (wastes <= ~8*g rows instead
    # of up to a full block_rows-1 rows).  2048 rows * 128 lanes * 4 B = 1 MiB
    # per buffer; with the stacked 2-channel input and double buffering this
    # stays ~6 MiB, well under every generation's default scoped VMEM.
    g = pl.cdiv(_round_up(rows, 8), int(block_rows))
    tr = int(_round_up(pl.cdiv(rows, g), 8))
    rows_p = g * tr
    n_p = rows_p * _LANES

    # One stacked lane-dense slab (C, rows_p, 128): a single fused
    # moveaxis+reshape+pad copy instead of per-channel slice+pad copies.
    # Zero padding is harmless (tanh(0)=0, atan2(0,0) guarded to 0) and is
    # dropped on the way out.
    flat = jnp.moveaxis(batch, 1, 0).reshape(C, n)
    if n_p != n:
        flat = jnp.pad(flat, ((0, 0), (0, n_p - n)))
    slab = flat.reshape(C, rows_p, _LANES)

    if ndim == 1:
        kernel = partial(_angle1_kernel,
                         scale=-0.5 * float(angle_range),
                         offset=float(angle_min))
    else:
        kernel = partial(_angle2_kernel,
                         scale=float(angle_range) / (2.0 * math.pi),
                         offset=float(angle_min))

    def call(dim_sems):
        return pl.pallas_call(
            kernel,
            out_shape=jax.ShapeDtypeStruct((rows_p, _LANES), jnp.float32),
            grid=(g,),
            in_specs=[pl.BlockSpec((C, tr, _LANES), lambda i: (0, i, 0))],
            out_specs=pl.BlockSpec((tr, _LANES), lambda i: (i, 0)),
            compiler_params=pltpu.CompilerParams(dimension_semantics=dim_sems),
        )(slab)

    try:
        # v7x: actually shard the row-tile axis across both TensorCores
        # (plain "parallel" does not change codegen there).
        out2d = call((pltpu.CORE_PARALLEL,))
    except Exception:
        out2d = call(("parallel",))

    # TODO(synk): the un-pad copy below only disappears if the caller accepts
    # the padded lane-dense layout; the module contract is (B, H, W).
    return out2d.reshape(-1)[:n].reshape(B, H, W)


# ------------------------------ reference -----------------------------------

def _reference(batch, ndim, angle_range=180.0, angle_min=0.0):
    if ndim == 1:
        return angle_range * (0.5 - jax.nn.sigmoid(batch[:, 0])) + angle_min
    px = 1.0 - 2.0 * jax.nn.sigmoid(batch[:, 0])
    py = 1.0 - 2.0 * jax.nn.sigmoid(batch[:, 1])
    return angle_range / 360.0 * jnp.rad2deg(jnp.arctan2(px, py)) + angle_min


# --------------------------------- main --------------------------------------

if __name__ == "__main__":
    key = jax.random.PRNGKey(0)
    k1, k2 = jax.random.split(key)

    # ndim=2 path: (B=2, C=2, H=16, W=16)
    batch2 = jax.random.normal(k1, (2, 2, 16, 16), dtype=jnp.float32)
    out2 = jax.block_until_ready(angle_parser_legacy(batch2, ndim=2))
    ref2 = _reference(batch2, ndim=2)
    assert out2.shape == (2, 16, 16)
    assert out2.dtype == jnp.float32
    assert jnp.allclose(out2, ref2, atol=1e-3), float(jnp.max(jnp.abs(out2 - ref2)))

    # ndim=1 path: (B=2, C=1, H=16, W=16)
    batch1 = jax.random.normal(k2, (2, 1, 16, 16), dtype=jnp.float32)
    out1 = jax.block_until_ready(angle_parser_legacy(batch1, ndim=1))
    ref1 = _reference(batch1, ndim=1)
    assert out1.shape == (2, 16, 16)
    assert jnp.allclose(out1, ref1, atol=1e-4), float(jnp.max(jnp.abs(out1 - ref1)))

    print("KERNEL_OK")
</pallas_src>

<mosaic_0001>
module attributes {stable_mosaic.version = 11 : i64} {
  func.func @_angle2_kernel(%arg0: i32, %arg1: memref<2x8x128xf32, #tpu.memory_space<vmem>>, %arg2: memref<8x128xf32, #tpu.memory_space<vmem>>) attributes {dimension_semantics = [#tpu.dimension_semantics<core_parallel>], iteration_bounds = array<i64: 1>, scalar_prefetch = 0 : i64, scratch_operands = 0 : i64, tpu.core_type = #tpu.core_type<tc>, window_params = [{transform_indices = @transform_0, window_bounds = array<i64: 2, 8, 128>}, {transform_indices = @transform_1, window_bounds = array<i64: 8, 128>}]} {
    %c0 = arith.constant 0 : index
    %c0_0 = arith.constant 0 : index
    %c0_1 = arith.constant 0 : index
    %0 = vector.load %arg1[%c0, %c0_0, %c0_1] : memref<2x8x128xf32, #tpu.memory_space<vmem>>, vector<1x8x128xf32>
    %1 = vector.shape_cast %0 : vector<1x8x128xf32> to vector<8x128xf32>
    %cst = arith.constant -5.000000e-01 : f32
    %2 = vector.broadcast %cst : f32 to vector<8x128xf32>
    %3 = arith.mulf %2, %1 : vector<8x128xf32>
    %4 = math.tanh %3 : vector<8x128xf32>
    %c1 = arith.constant 1 : index
    %c0_2 = arith.constant 0 : index
    %c0_3 = arith.constant 0 : index
    %5 = vector.load %arg1[%c1, %c0_2, %c0_3] : memref<2x8x128xf32, #tpu.memory_space<vmem>>, vector<1x8x128xf32>
    %6 = vector.shape_cast %5 : vector<1x8x128xf32> to vector<8x128xf32>
    %cst_4 = arith.constant -5.000000e-01 : f32
    %7 = vector.broadcast %cst_4 : f32 to vector<8x128xf32>
    %8 = arith.mulf %7, %6 : vector<8x128xf32>
    %9 = math.tanh %8 : vector<8x128xf32>
    %10 = math.absf %4 : vector<8x128xf32>
    %11 = math.absf %9 : vector<8x128xf32>
    %12 = arith.maximumf %11, %10 : vector<8x128xf32>
    %13 = arith.minimumf %11, %10 : vector<8x128xf32>
    %cst_5 = arith.constant 0.414213568 : f32
    %14 = vector.broadcast %cst_5 : f32 to vector<8x128xf32>
    %15 = arith.mulf %14, %12 : vector<8x128xf32>
    %16 = arith.cmpf ogt, %13, %15 : vector<8x128xf32>
    %17 = arith.subf %13, %12 : vector<8x128xf32>
    %18 = arith.select %16, %17, %13 : vector<8x128xi1>, vector<8x128xf32>
    %19 = arith.addf %13, %12 : vector<8x128xf32>
    %20 = arith.select %16, %19, %12 : vector<8x128xi1>, vector<8x128xf32>
    %cst_6 = arith.constant 1.17549435E-38 : f32
    %21 = vector.broadcast %cst_6 : f32 to vector<8x128xf32>
    %22 = arith.cmpf olt, %12, %21 : vector<8x128xf32>
    %cst_7 = arith.constant 1.000000e+00 : f32
    %23 = vector.broadcast %cst_7 : f32 to vector<8x128xf32>
    %24 = arith.select %22, %23, %20 : vector<8x128xi1>, vector<8x128xf32>
    %25 = tpu.reciprocal %24 {approx = true} : vector<8x128xf32> -> vector<8x128xf32>
    %26 = arith.mulf %24, %25 : vector<8x128xf32>
    %cst_8 = arith.constant 2.000000e+00 : f32
    %27 = vector.broadcast %cst_8 : f32 to vector<8x128xf32>
    %28 = arith.subf %27, %26 : vector<8x128xf32>
    %29 = arith.mulf %25, %28 : vector<8x128xf32>
    %30 = arith.mulf %18, %29 : vector<8x128xf32>
    %31 = arith.mulf %30, %30 : vector<8x128xf32>
    %cst_9 = arith.constant 2.30722785 : f32
    %32 = vector.broadcast %cst_9 : f32 to vector<8x128xf32>
    %33 = arith.mulf %32, %31 : vector<8x128xf32>
    %cst_10 = arith.constant -3.97566414 : f32
    %34 = vector.broadcast %cst_10 : f32 to vector<8x128xf32>
    %35 = arith.addf %33, %34 : vector<8x128xf32>
    %36 = arith.mulf %35, %31 : vector<8x128xf32>
    %cst_11 = arith.constant 5.72319269 : f32
    %37 = vector.broadcast %cst_11 : f32 to vector<8x128xf32>
    %38 = arith.addf %36, %37 : vector<8x128xf32>
    %39 = arith.mulf %38, %31 : vector<8x128xf32>
    %cst_12 = arith.constant -9.5491867 : f32
    %40 = vector.broadcast %cst_12 : f32 to vector<8x128xf32>
    %41 = arith.addf %39, %40 : vector<8x128xf32>
    %42 = arith.mulf %41, %31 : vector<8x128xf32>
    %cst_13 = arith.constant 28.6478901 : f32
    %43 = vector.broadcast %cst_13 : f32 to vector<8x128xf32>
    %44 = arith.addf %42, %43 : vector<8x128xf32>
    %45 = arith.mulf %44, %30 : vector<8x128xf32>
    %cst_14 = arith.constant 2.250000e+01 : f32
    %46 = vector.broadcast %cst_14 : f32 to vector<8x128xf32>
    %47 = arith.addf %46, %45 : vector<8x128xf32>
    %48 = arith.select %16, %47, %45 : vector<8x128xi1>, vector<8x128xf32>
    %49 = arith.cmpf ogt, %10, %11 : vector<8x128xf32>
    %cst_15 = arith.constant 4.500000e+01 : f32
    %50 = vector.broadcast %cst_15 : f32 to vector<8x128xf32>
    %51 = arith.subf %50, %48 : vector<8x128xf32>
    %52 = arith.select %49, %51, %48 : vector<8x128xi1>, vector<8x128xf32>
    %cst_16 = arith.constant 0.000000e+00 : f32
    %53 = vector.broadcast %cst_16 : f32 to vector<8x128xf32>
    %54 = arith.cmpf olt, %9, %53 : vector<8x128xf32>
    %cst_17 = arith.constant 9.000000e+01 : f32
    %55 = vector.broadcast %cst_17 : f32 to vector<8x128xf32>
    %56 = arith.subf %55, %52 : vector<8x128xf32>
    %57 = arith.select %54, %56, %52 : vector<8x128xi1>, vector<8x128xf32>
    %cst_18 = arith.constant 0.000000e+00 : f32
    %58 = vector.broadcast %cst_18 : f32 to vector<8x128xf32>
    %59 = arith.cmpf olt, %4, %58 : vector<8x128xf32>
    %cst_19 = arith.constant 0.000000e+00 : f32
    %60 = vector.broadcast %cst_19 : f32 to vector<8x128xf32>
    %61 = arith.subf %60, %57 : vector<8x128xf32>
    %62 = arith.select %59, %61, %57 : vector<8x128xi1>, vector<8x128xf32>
    %cst_20 = arith.constant 0.000000e+00 : f32
    %63 = vector.broadcast %cst_20 : f32 to vector<8x128xf32>
    %64 = arith.addf %62, %63 : vector<8x128xf32>
    %c0_21 = arith.constant 0 : index
    %c0_22 = arith.constant 0 : index
    %65 = vector.load %arg2[%c0_21, %c0_22] : memref<8x128xf32, #tpu.memory_space<vmem>>, vector<8x128xf32>
    tpu.vector_store %arg2[%c0_21, %c0_22], %64 {strides = array<i32>} : memref<8x128xf32, #tpu.memory_space<vmem>>, vector<8x128xf32>,
    return
  }
  func.func @transform_0(%arg0: i32) -> (i32, i32, i32) {
    %c0_i32 = arith.constant 0 : i32
    %c0_i32_0 = arith.constant 0 : i32
    %c0_i32_1 = arith.constant 0 : i32
    return %c0_i32, %arg0, %c0_i32_0 : i32, i32, i32
  }
  func.func @transform_1(%arg0: i32) -> (i32, i32) {
    %c0_i32 = arith.constant 0 : i32
    %c0_i32_0 = arith.constant 0 : i32
    return %arg0, %c0_i32 : i32, i32
  }
}

module attributes {stable_mosaic.version = 11 : i64} {
  func.func @_angle2_kernel(%arg0: i32, %arg1: memref<2x8x128xf32, #tpu.memory_space<vmem>>, %arg2: memref<8x128xf32, #tpu.memory_space<vmem>>) attributes {dimension_semantics = [#tpu.dimension_semantics<parallel>], iteration_bounds = array<i64: 1>, scalar_prefetch = 0 : i64, scratch_operands = 0 : i64, tpu.core_type = #tpu.core_type<tc>, window_params = [{transform_indices = @transform_0, window_bounds = array<i64: 2, 8, 128>}, {transform_indices = @transform_1, window_bounds = array<i64: 8, 128>}]} {
    %c0 = arith.constant 0 : index
    %c0_0 = arith.constant 0 : index
    %c0_1 = arith.constant 0 : index
    %0 = vector.load %arg1[%c0, %c0_0, %c0_1] : memref<2x8x128xf32, #tpu.memory_space<vmem>>, vector<1x8x128xf32>
    %1 = vector.shape_cast %0 : vector<1x8x128xf32> to vector<8x128xf32>
    %cst = arith.constant -5.000000e-01 : f32
    %2 = vector.broadcast %cst : f32 to vector<8x128xf32>
    %3 = arith.mulf %2, %1 : vector<8x128xf32>
    %4 = math.tanh %3 : vector<8x128xf32>
    %c1 = arith.constant 1 : index
    %c0_2 = arith.constant 0 : index
    %c0_3 = arith.constant 0 : index
    %5 = vector.load %arg1[%c1, %c0_2, %c0_3] : memref<2x8x128xf32, #tpu.memory_space<vmem>>, vector<1x8x128xf32>
    %6 = vector.shape_cast %5 : vector<1x8x128xf32> to vector<8x128xf32>
    %cst_4 = arith.constant -5.000000e-01 : f32
    %7 = vector.broadcast %cst_4 : f32 to vector<8x128xf32>
    %8 = arith.mulf %7, %6 : vector<8x128xf32>
    %9 = math.tanh %8 : vector<8x128xf32>
    %10 = math.absf %4 : vector<8x128xf32>
    %11 = math.absf %9 : vector<8x128xf32>
    %12 = arith.maximumf %11, %10 : vector<8x128xf32>
    %13 = arith.minimumf %11, %10 : vector<8x128xf32>
    %cst_5 = arith.constant 0.414213568 : f32
    %14 = vector.broadcast %cst_5 : f32 to vector<8x128xf32>
    %15 = arith.mulf %14, %12 : vector<8x128xf32>
    %16 = arith.cmpf ogt, %13, %15 : vector<8x128xf32>
    %17 = arith.subf %13, %12 : vector<8x128xf32>
    %18 = arith.select %16, %17, %13 : vector<8x128xi1>, vector<8x128xf32>
    %19 = arith.addf %13, %12 : vector<8x128xf32>
    %20 = arith.select %16, %19, %12 : vector<8x128xi1>, vector<8x128xf32>
    %cst_6 = arith.constant 1.17549435E-38 : f32
    %21 = vector.broadcast %cst_6 : f32 to vector<8x128xf32>
    %22 = arith.cmpf olt, %12, %21 : vector<8x128xf32>
    %cst_7 = arith.constant 1.000000e+00 : f32
    %23 = vector.broadcast %cst_7 : f32 to vector<8x128xf32>
    %24 = arith.select %22, %23, %20 : vector<8x128xi1>, vector<8x128xf32>
    %25 = tpu.reciprocal %24 {approx = true} : vector<8x128xf32> -> vector<8x128xf32>
    %26 = arith.mulf %24, %25 : vector<8x128xf32>
    %cst_8 = arith.constant 2.000000e+00 : f32
    %27 = vector.broadcast %cst_8 : f32 to vector<8x128xf32>
    %28 = arith.subf %27, %26 : vector<8x128xf32>
    %29 = arith.mulf %25, %28 : vector<8x128xf32>
    %30 = arith.mulf %18, %29 : vector<8x128xf32>
    %31 = arith.mulf %30, %30 : vector<8x128xf32>
    %cst_9 = arith.constant 2.30722785 : f32
    %32 = vector.broadcast %cst_9 : f32 to vector<8x128xf32>
    %33 = arith.mulf %32, %31 : vector<8x128xf32>
    %cst_10 = arith.constant -3.97566414 : f32
    %34 = vector.broadcast %cst_10 : f32 to vector<8x128xf32>
    %35 = arith.addf %33, %34 : vector<8x128xf32>
    %36 = arith.mulf %35, %31 : vector<8x128xf32>
    %cst_11 = arith.constant 5.72319269 : f32
    %37 = vector.broadcast %cst_11 : f32 to vector<8x128xf32>
    %38 = arith.addf %36, %37 : vector<8x128xf32>
    %39 = arith.mulf %38, %31 : vector<8x128xf32>
    %cst_12 = arith.constant -9.5491867 : f32
    %40 = vector.broadcast %cst_12 : f32 to vector<8x128xf32>
    %41 = arith.addf %39, %40 : vector<8x128xf32>
    %42 = arith.mulf %41, %31 : vector<8x128xf32>
    %cst_13 = arith.constant 28.6478901 : f32
    %43 = vector.broadcast %cst_13 : f32 to vector<8x128xf32>
    %44 = arith.addf %42, %43 : vector<8x128xf32>
    %45 = arith.mulf %44, %30 : vector<8x128xf32>
    %cst_14 = arith.constant 2.250000e+01 : f32
    %46 = vector.broadcast %cst_14 : f32 to vector<8x128xf32>
    %47 = arith.addf %46, %45 : vector<8x128xf32>
    %48 = arith.select %16, %47, %45 : vector<8x128xi1>, vector<8x128xf32>
    %49 = arith.cmpf ogt, %10, %11 : vector<8x128xf32>
    %cst_15 = arith.constant 4.500000e+01 : f32
    %50 = vector.broadcast %cst_15 : f32 to vector<8x128xf32>
    %51 = arith.subf %50, %48 : vector<8x128xf32>
    %52 = arith.select %49, %51, %48 : vector<8x128xi1>, vector<8x128xf32>
    %cst_16 = arith.constant 0.000000e+00 : f32
    %53 = vector.broadcast %cst_16 : f32 to vector<8x128xf32>
    %54 = arith.cmpf olt, %9, %53 : vector<8x128xf32>
    %cst_17 = arith.constant 9.000000e+01 : f32
    %55 = vector.broadcast %cst_17 : f32 to vector<8x128xf32>
    %56 = arith.subf %55, %52 : vector<8x128xf32>
    %57 = arith.select %54, %56, %52 : vector<8x128xi1>, vector<8x128xf32>
    %cst_18 = arith.constant 0.000000e+00 : f32
    %58 = vector.broadcast %cst_18 : f32 to vector<8x128xf32>
    %59 = arith.cmpf olt, %4, %58 : vector<8x128xf32>
    %cst_19 = arith.constant 0.000000e+00 : f32
    %60 = vector.broadcast %cst_19 : f32 to vector<8x128xf32>
    %61 = arith.subf %60, %57 : vector<8x128xf32>
    %62 = arith.select %59, %61, %57 : vector<8x128xi1>, vector<8x128xf32>
    %cst_20 = arith.constant 0.000000e+00 : f32
    %63 = vector.broadcast %cst_20 : f32 to vector<8x128xf32>
    %64 = arith.addf %62, %63 : vector<8x128xf32>
    %c0_21 = arith.constant 0 : index
    %c0_22 = arith.constant 0 : index
    %65 = vector.load %arg2[%c0_21, %c0_22] : memref<8x128xf32, #tpu.memory_space<vmem>>, vector<8x128xf32>
    tpu.vector_store %arg2[%c0_21, %c0_22], %64 {strides = array<i32>} : memref<8x128xf32, #tpu.memory_space<vmem>>, vector<8x128xf32>,
    return
  }
  func.func @transform_0(%arg0: i32) -> (i32, i32, i32) {
    %c0_i32 = arith.constant 0 : i32
    %c0_i32_0 = arith.constant 0 : i32
    %c0_i32_1 = arith.constant 0 : i32
    return %c0_i32, %arg0, %c0_i32_0 : i32, i32, i32
  }
  func.func @transform_1(%arg0: i32) -> (i32, i32) {
    %c0_i32 = arith.constant 0 : i32
    %c0_i32_0 = arith.constant 0 : i32
    return %arg0, %c0_i32 : i32, i32
  }
}

</mosaic_0001>

<bundles_post_ra>
// kernel: tpu_custom_call.1
= control target key start
LH: loop header
LB: loop body
LE: loop exit
PB: predicated region body
PF: predicated region fallthrough
CT: control target
= control target key end

     0   :  { %s167_s6 = sld [smem:[#allocation0]]   ;;  %s189_s0 = inlined_call_operand.hbm [shape: f32[2,8,128], index: 0, kind: input, shape index: {}]   ;;  %s190_s1 = inlined_call_operand.hbm [shape: f32[8,128], index: 1, kind: output, shape index: {}]  }
   0x1   :  { %6 = vsyncpa [#allocation3], 0 }
   0x2   :  { %7 = vsyncpa [#allocation4], 0  ;;  %s153_s11 = smov [#allocation2]   ;;  %s107_s16 = scalar_lea.hbm %s189_s0, 256 }
   0x3   :  { %s15_s12 = sshll.u32 %s153_s11, 4  ;;  %s16_s12 = int_to_ptr.vmem [resolvable:$true] %s15_s12 }
   0x6   :  { %s93_s7 = sshll.u32 %s167_s6, 7 }
   0x7   :  { %s14_s10 = scalar_lea.hbm %s189_s0, %s93_s7 }
   0x8   :  { %s105_s13 = scalar_lea.hbm %s14_s10, 256 }
   0x9   :  { %p106_p0 = scmp.ne.s32.totalorder %s14_s10, %s105_s13  ;;  %p109_p1 = scmp.lt.s32.totalorder %s107_s16, %s105_s13 }
   0xb   :  { %p111_p2 = pnand %p109_p1, %p106_p0 }
   0xd   :  { %114 = shalt.err (!%p111_p2)
}
   0xe   :  { %s115_s17 = scalar_lea.vmem %s16_s12, 256  ;;  %p120_p4 = scmp.lt.s32.totalorder %s16_s12, %s16_s12 }
   0xf   :  { %p116_p3 = scmp.ne.s32.totalorder %s16_s12, %s115_s17  ;;  %p121_p5 = scmp.lt.s32.totalorder %s115_s17, %s115_s17 }
  0x11   :  { %p122_p6 = por %p121_p5, %p120_p4 }
  0x13   :  { %p123_p7 = pnand %p122_p6, %p116_p3 }
  0x15   :  { %126 = shalt.err (!%p123_p7)
}
  0x16   :  { %s154_s18 = smov 128   ;;  %s155_s19 = smov 8  }
  0x17   :  { %21 = dma.hbm_to_vmem [thread:$0]  %s14_s10, 256, %s16_s12, [#allocation3], %s154_s18, %s154_s18, %s155_s19  }
  0x18   :  { %149 = dma.done.wait [#allocation3], 256  }
  0x19   :  { %150 = vsyncadd [#allocation3], 4294967040  ;;  %v25_v0 = vld [vmem:[#allocation2] sm:$0xff]  ;;  %v29_v1 = vld [vmem:[#allocation2 + $0x8] sm:$0xff]  ;;  %s156_s0 = smov [#allocation5]   ;;  %s78_s23 = scalar_lea.hbm %s190_s1, %s93_s7 }
  0x1a   :  { %v26_v2 = vmul.f32 -0.5, %v25_v0  ;;  %v30_v3 = vmul.f32 -0.5, %v29_v1  ;;  %s80_s20 = sshll.u32 %s156_s0, 4  ;;  %s81_s20 = int_to_ptr.vmem [resolvable:$true] %s80_s20 }
  0x1b   :  { %s127_s24 = scalar_lea.vmem %s81_s20, 128  ;;  %p132_p9 = scmp.lt.s32.totalorder %s81_s20, %s81_s20 }
  0x1c   :  { %99 = vtanh.f32 %v26_v2  ;;  %p128_p8 = scmp.ne.s32.totalorder %s81_s20, %s127_s24  ;;  %p133_p10 = scmp.lt.s32.totalorder %s127_s24, %s127_s24 }
  0x1d   :  { %101 = vtanh.f32 %v30_v3 }
  0x1e   :  { %p134_p11 = por %p133_p10, %p132_p9 }
  0x20   :  { %p135_p12 = pnand %p134_p11, %p128_p8 }
  0x29   :  { %v100_v4 = vpop.eup %99 }
  0x2a   :  { %v102_v5 = vpop.eup %101  ;;  %v32_v6 = vand.u32 2147483647, %v100_v4  ;;  %vm67_vm4 = vcmp.lt.f32.partialorder %v100_v4, 0.0 }
  0x2b   :  { %v33_v7 = vand.u32 2147483647, %v102_v5  ;;  %vm64_vm3 = vcmp.lt.f32.partialorder %v102_v5, 0.0 }
  0x2d   :  { %v34_v8 = vmax.f32 %v33_v7, %v32_v6  ;;  %v35_v9 = vmin.f32 %v33_v7, %v32_v6  ;;  %vm61_vm2 = vcmp.gt.f32.partialorder %v32_v6, %v33_v7 }
  0x2f   :  { %v36_v10 = vmul.f32 0.41421357, %v34_v8  ;;  %v40_v11 = vadd.f32 %v35_v9, %v34_v8  ;;  %vm42_vm0 = vcmp.lt.f32.partialorder %v34_v8, 1.1754944e-38  ;;  %v38_v15 = vsub.f32 %v35_v9, %v34_v8 }
  0x31   :  { %vm37_vm1 = vcmp.gt.f32.partialorder %v35_v9, %v36_v10 }
  0x32   :  { %v41_v12 = vsel %vm37_vm1, %v40_v11, %v34_v8  ;;  %v39_v18 = vsel %vm37_vm1, %v38_v15, %v35_v9 }
  0x33   :  { %v43_v13 = vsel %vm42_vm0, 1.0, %v41_v12 }
  0x34   :  { %103 = vrcp.f32 %v43_v13 }
  0x41   :  { %v104_v14 = vpop.eup %103 }
  0x42   :  { %v45_v16 = vmul.f32 %v104_v14, %v43_v13 }
  0x44   :  { %v46_v17 = vsub.f32 2.0, %v45_v16 }
  0x46   :  { %v47_v19 = vmul.f32 %v104_v14, %v46_v17 }
  0x48   :  { %v48_v20 = vmul.f32 %v47_v19, %v39_v18 }
  0x4a   :  { %v49_v21 = vmul.f32 %v48_v20, %v48_v20 }
  0x4c   :  { %v50_v22 = vmul.f32 2.3072278, %v49_v21 }
  0x4e   :  { %v51_v23 = vadd.f32 -3.9756641, %v50_v22 }
  0x50   :  { %v52_v24 = vmul.f32 %v51_v23, %v49_v21 }
  0x52   :  { %v53_v25 = vadd.f32 5.7231927, %v52_v24 }
  0x54   :  { %v54_v26 = vmul.f32 %v53_v25, %v49_v21 }
  0x56   :  { %v55_v27 = vadd.f32 -9.549187, %v54_v26 }
  0x58   :  { %v56_v28 = vmul.f32 %v55_v27, %v49_v21 }
  0x5a   :  { %v57_v29 = vadd.f32 28.64789, %v56_v28 }
  0x5c   :  { %v58_v30 = vmul.f32 %v57_v29, %v48_v20 }
  0x5e   :  { %v59_v31 = vadd.f32 22.5, %v58_v30 }
  0x60   :  { %v60_v32 = vsel %vm37_vm1, %v59_v31, %v58_v30 }
  0x61   :  { %v62_v33 = vsub.f32 45.0, %v60_v32 }
  0x63   :  { %v63_v34 = vsel %vm61_vm2, %v62_v33, %v60_v32 }
  0x64   :  { %v65_v35 = vsub.f32 90.0, %v63_v34 }
  0x66   :  { %v66_v36 = vsel %vm64_vm3, %v65_v35, %v63_v34 }
  0x67   :  { %v68_v37 = vsub.f32 0.0, %v66_v36 }
  0x69   :  { %v69_v38 = vsel %vm67_vm4, %v68_v37, %v66_v36 }
  0x6a   :  { %71 = vst [vmem:[#allocation5] sm:$0xff] %v69_v38 }
  0x6b   :  { %138 = shalt.err (!%p135_p12)
}
  0x6c   :  { %s139_s25 = scalar_lea.hbm %s78_s23, 128  ;;  %s141_s28 = scalar_lea.hbm %s190_s1, 128 }
  0x6d   :  { %p140_p13 = scmp.ne.s32.totalorder %s78_s23, %s139_s25  ;;  %p143_p0 = scmp.lt.s32.totalorder %s141_s28, %s139_s25 }
  0x6f   :  { %p145_p1 = pnand %p143_p0, %p140_p13 }
  0x71   :  { %148 = shalt.err (!%p145_p1)
}
  0x72   :  { %83 = dma.vmem_to_hbm [thread:$0]  %s81_s20, 128, %s78_s23, [#allocation4]  }
  0x73   :  { %151 = dma.done.wait [#allocation4], 128  }
  0x74   :  { %152 = vsyncadd [#allocation4], 4294967168 }
  0x75   :  { %87 = vsyncpa [#allocation3], 1 }
  0x76   :  { %88 = vsyncpa [#allocation4], 1 }

// kernel: tpu_custom_call.1
= control target key start
LH: loop header
LB: loop body
LE: loop exit
PB: predicated region body
PF: predicated region fallthrough
CT: control target
= control target key end

     0   :  { %6 = vsyncpa [#allocation3], 0  ;;  %s162_s0 = inlined_call_operand.hbm [shape: f32[2,8,128], index: 0, kind: input, shape index: {}]   ;;  %s163_s1 = inlined_call_operand.hbm [shape: f32[8,128], index: 1, kind: output, shape index: {}]  }
   0x1   :  { %7 = vsyncpa [#allocation4], 0  ;;  %s139_s6 = smov [#allocation2]  }
   0x2   :  { %s13_s7 = sshll.u32 %s139_s6, 4  ;;  %s14_s7 = int_to_ptr.vmem [resolvable:$true] %s13_s7 }
   0x3   :  { %s103_s8 = scalar_lea.vmem %s14_s7, 256  ;;  %p108_p1 = scmp.lt.s32.totalorder %s14_s7, %s14_s7 }
   0x4   :  { %p104_p0 = scmp.ne.s32.totalorder %s14_s7, %s103_s8  ;;  %p109_p2 = scmp.lt.s32.totalorder %s103_s8, %s103_s8 }
   0x6   :  { %p110_p3 = por %p109_p2, %p108_p1 }
   0x8   :  { %p111_p4 = pnand %p110_p3, %p104_p0 }
   0xa   :  { %114 = shalt.err (!%p111_p4)
}
   0xb   :  { %s140_s9 = smov 128   ;;  %s141_s10 = smov 8  }
   0xc   :  { %19 = dma.hbm_to_vmem [thread:$0]  %s162_s0, 256, %s14_s7, [#allocation3], %s140_s9, %s140_s9, %s141_s10  }
   0xd   :  { %135 = dma.done.wait [#allocation3], 256  }
   0xe   :  { %136 = vsyncadd [#allocation3], 4294967040  ;;  %v23_v0 = vld [vmem:[#allocation2] sm:$0xff]  ;;  %v27_v1 = vld [vmem:[#allocation2 + $0x8] sm:$0xff]  ;;  %s142_s0 = smov [#allocation5]  }
   0xf   :  { %v24_v2 = vmul.f32 -0.5, %v23_v0  ;;  %v28_v3 = vmul.f32 -0.5, %v27_v1  ;;  %s76_s13 = sshll.u32 %s142_s0, 4  ;;  %s77_s13 = int_to_ptr.vmem [resolvable:$true] %s76_s13 }
  0x10   :  { %s115_s14 = scalar_lea.vmem %s77_s13, 128  ;;  %p120_p6 = scmp.lt.s32.totalorder %s77_s13, %s77_s13 }
  0x11   :  { %89 = vtanh.f32 %v24_v2  ;;  %p116_p5 = scmp.ne.s32.totalorder %s77_s13, %s115_s14  ;;  %p121_p7 = scmp.lt.s32.totalorder %s115_s14, %s115_s14 }
  0x12   :  { %91 = vtanh.f32 %v28_v3 }
  0x13   :  { %p122_p8 = por %p121_p7, %p120_p6 }
  0x15   :  { %p123_p9 = pnand %p122_p8, %p116_p5 }
  0x1e   :  { %v90_v4 = vpop.eup %89 }
  0x1f   :  { %v92_v5 = vpop.eup %91  ;;  %v30_v6 = vand.u32 2147483647, %v90_v4  ;;  %vm65_vm4 = vcmp.lt.f32.partialorder %v90_v4, 0.0 }
  0x20   :  { %v31_v7 = vand.u32 2147483647, %v92_v5  ;;  %vm62_vm3 = vcmp.lt.f32.partialorder %v92_v5, 0.0 }
  0x22   :  { %v32_v8 = vmax.f32 %v31_v7, %v30_v6  ;;  %v33_v9 = vmin.f32 %v31_v7, %v30_v6  ;;  %vm59_vm2 = vcmp.gt.f32.partialorder %v30_v6, %v31_v7 }
  0x24   :  { %v34_v10 = vmul.f32 0.41421357, %v32_v8  ;;  %v38_v11 = vadd.f32 %v33_v9, %v32_v8  ;;  %vm40_vm0 = vcmp.lt.f32.partialorder %v32_v8, 1.1754944e-38  ;;  %v36_v15 = vsub.f32 %v33_v9, %v32_v8 }
  0x26   :  { %vm35_vm1 = vcmp.gt.f32.partialorder %v33_v9, %v34_v10 }
  0x27   :  { %v39_v12 = vsel %vm35_vm1, %v38_v11, %v32_v8  ;;  %v37_v18 = vsel %vm35_vm1, %v36_v15, %v33_v9 }
  0x28   :  { %v41_v13 = vsel %vm40_vm0, 1.0, %v39_v12 }
  0x29   :  { %93 = vrcp.f32 %v41_v13 }
  0x36   :  { %v94_v14 = vpop.eup %93 }
  0x37   :  { %v43_v16 = vmul.f32 %v94_v14, %v41_v13 }
  0x39   :  { %v44_v17 = vsub.f32 2.0, %v43_v16 }
  0x3b   :  { %v45_v19 = vmul.f32 %v94_v14, %v44_v17 }
  0x3d   :  { %v46_v20 = vmul.f32 %v45_v19, %v37_v18 }
  0x3f   :  { %v47_v21 = vmul.f32 %v46_v20, %v46_v20 }
  0x41   :  { %v48_v22 = vmul.f32 2.3072278, %v47_v21 }
  0x43   :  { %v49_v23 = vadd.f32 -3.9756641, %v48_v22 }
  0x45   :  { %v50_v24 = vmul.f32 %v49_v23, %v47_v21 }
  0x47   :  { %v51_v25 = vadd.f32 5.7231927, %v50_v24 }
  0x49   :  { %v52_v26 = vmul.f32 %v51_v25, %v47_v21 }
  0x4b   :  { %v53_v27 = vadd.f32 -9.549187, %v52_v26 }
  0x4d   :  { %v54_v28 = vmul.f32 %v53_v27, %v47_v21 }
  0x4f   :  { %v55_v29 = vadd.f32 28.64789, %v54_v28 }
  0x51   :  { %v56_v30 = vmul.f32 %v55_v29, %v46_v20 }
  0x53   :  { %v57_v31 = vadd.f32 22.5, %v56_v30 }
  0x55   :  { %v58_v32 = vsel %vm35_vm1, %v57_v31, %v56_v30 }
  0x56   :  { %v60_v33 = vsub.f32 45.0, %v58_v32 }
  0x58   :  { %v61_v34 = vsel %vm59_vm2, %v60_v33, %v58_v32 }
  0x59   :  { %v63_v35 = vsub.f32 90.0, %v61_v34 }
  0x5b   :  { %v64_v36 = vsel %vm62_vm3, %v63_v35, %v61_v34 }
  0x5c   :  { %v66_v37 = vsub.f32 0.0, %v64_v36 }
  0x5e   :  { %v67_v38 = vsel %vm65_vm4, %v66_v37, %v64_v36 }
  0x5f   :  { %69 = vst [vmem:[#allocation5] sm:$0xff] %v67_v38 }
  0x60   :  { %126 = shalt.err (!%p123_p9)
}
  0x61   :  { %79 = dma.vmem_to_hbm [thread:$0]  %s77_s13, 128, %s163_s1, [#allocation4]  }
  0x62   :  { %137 = dma.done.wait [#allocation4], 128  }
  0x63   :  { %138 = vsyncadd [#allocation4], 4294967168 }
  0x64   :  { %83 = vsyncpa [#allocation3], 1 }
  0x65   :  { %84 = vsyncpa [#allocation4], 1 }

</bundles_post_ra>
